<compile_context>
chip_gen: v5e
topology: v5e:2x2
jax: 0.10.0
libtpu: 0.0.40
codegen_flags: <defaults>
</compile_context>

<pallas_src>
import jax
import jax.numpy as jnp
from jax.experimental import pallas as pl
from jax.experimental.pallas import tpu as pltpu

IN_DIM = 42
HID_DIM = 64
OUT_DIM = 1


def _round_up(n, m):
    return ((n + m - 1) // m) * m


def gripper_kernel(x_ref, w1t_ref, b1_ref, w2_ref, b2_ref, o_ref):
    # x_ref: [TILE_B, 42] f32, w1t_ref: [42, 64] f32 (VMEM-resident across the grid).
    # Layer 1 on the MXU, f32 in / f32 accumulate (MXU is far from the bottleneck).
    h = jnp.dot(x_ref[...], w1t_ref[...], preferred_element_type=jnp.float32)  # [TILE_B, 64]
    h = jnp.maximum(h + b1_ref[...], 0.0)
    # Layer 2 also on the MXU (instead of VPU mul + sublane reduce); bf16 h halves the
    # VMEM round-trip of the hidden activations.
    z = jnp.dot(h.astype(jnp.bfloat16), w2_ref[...],
                preferred_element_type=jnp.float32)                             # [TILE_B, 1]
    z = z + b2_ref[...]
    # Sigmoid written explicitly (exp goes to the EUP slot).
    o_ref[...] = (1.0 / (1.0 + jnp.exp(-z))).astype(o_ref.dtype)


def gripper_classifier(x, w1, b1, w2, b2, *, max_tile_b=8192):
    """x: [B, 42]. Weights in PyTorch layout: w1 [64, 42], b1 [64], w2 [1, 64], b2 [1]."""
    B = x.shape[0]
    assert x.shape[1] == IN_DIM
    x = jnp.asarray(x, jnp.float32)   # no-op when x is already f32 (no extra HBM pass)

    # Tile selection: balance tiles so batch padding is minimal, keep sublane granularity (8),
    # and give v7x's second TensorCore >=2 grid steps once the batch is large enough.
    num_tiles = max(1, pl.cdiv(B, max_tile_b))
    if num_tiles == 1 and B >= 2048:
        num_tiles = 2
    tile_b = _round_up(max(1, pl.cdiv(B, num_tiles)), 8)
    b_pad = num_tiles * tile_b

    if b_pad != B:
        # Only hit when B is not a clean multiple of 8*num_tiles; padded rows compute junk
        # that is sliced off below.
        x = jnp.pad(x, ((0, b_pad - B), (0, 0)))

    # Tiny weight-layout plumbing (a few KB; negligible).
    w1t = jnp.asarray(w1, jnp.float32).T                        # [42, 64]
    b1r = jnp.asarray(b1, jnp.float32).reshape(1, HID_DIM)      # [1, 64]
    w2c = jnp.asarray(w2, jnp.bfloat16).reshape(HID_DIM, OUT_DIM)  # [64, 1]; w2 arrives [1, 64]
    b2r = jnp.asarray(b2, jnp.float32).reshape(1, 1)            # [1, 1]

    out = pl.pallas_call(
        gripper_kernel,
        out_shape=jax.ShapeDtypeStruct((b_pad, OUT_DIM), jnp.float32),
        grid=(num_tiles,),
        in_specs=[
            pl.BlockSpec((tile_b, IN_DIM), lambda i: (i, 0)),    # x tile, double-buffered DMA
            pl.BlockSpec((IN_DIM, HID_DIM), lambda i: (0, 0)),   # W1^T, VMEM-resident
            pl.BlockSpec((1, HID_DIM), lambda i: (0, 0)),        # b1
            pl.BlockSpec((HID_DIM, OUT_DIM), lambda i: (0, 0)),  # w2 column
            pl.BlockSpec((1, 1), lambda i: (0, 0)),              # b2
        ],
        out_specs=pl.BlockSpec((tile_b, OUT_DIM), lambda i: (i, 0)),
        compiler_params=pltpu.CompilerParams(
            dimension_semantics=("parallel",),
            vmem_limit_bytes=48 * 1024 * 1024,
        ),
    )(x, w1t, b1r, w2c, b2r)

    return out[:B]


def init_params(key):
    k1, k2, k3, k4 = jax.random.split(key, 4)
    # PyTorch default nn.Linear init: uniform(-1/sqrt(fan_in), 1/sqrt(fan_in)).
    bound1 = 1.0 / jnp.sqrt(IN_DIM)
    bound2 = 1.0 / jnp.sqrt(HID_DIM)
    w1 = jax.random.uniform(k1, (HID_DIM, IN_DIM), jnp.float32, -bound1, bound1)
    b1 = jax.random.uniform(k2, (HID_DIM,), jnp.float32, -bound1, bound1)
    w2 = jax.random.uniform(k3, (OUT_DIM, HID_DIM), jnp.float32, -bound2, bound2)
    b2 = jax.random.uniform(k4, (OUT_DIM,), jnp.float32, -bound2, bound2)
    return w1, b1, w2, b2


if __name__ == "__main__":
    key = jax.random.PRNGKey(0)
    kx, kp = jax.random.split(key)
    batch = 8
    x = jax.random.normal(kx, (batch, IN_DIM), jnp.float32)
    w1, b1, w2, b2 = init_params(kp)

    out = gripper_classifier(x, w1, b1, w2, b2)
    out = jax.block_until_ready(out)

    # Reference in plain f32 JAX (PyTorch semantics: y = x @ W.T + b).
    ref = jax.nn.sigmoid(jnp.maximum(x @ w1.T + b1, 0.0) @ w2.T + b2)
    assert out.shape == (batch, OUT_DIM)
    # Layer 1 is full f32; only relu(h)/w2 are bf16 -> ~1e-3 worst-case error on a sigmoid output.
    assert jnp.allclose(out, ref, atol=5e-3), "mismatch vs reference"
    print("KERNEL_OK")
</pallas_src>

<mosaic_0001>
module attributes {stable_mosaic.version = 11 : i64} {
  func.func @gripper_kernel(%arg0: i32, %arg1: memref<8x42xf32, #tpu.memory_space<vmem>>, %arg2: memref<42x64xf32, #tpu.memory_space<vmem>>, %arg3: memref<1x64xf32, #tpu.memory_space<vmem>>, %arg4: memref<64x1xbf16, #tpu.memory_space<vmem>>, %arg5: memref<1x1xf32, #tpu.memory_space<vmem>>, %arg6: memref<8x1xf32, #tpu.memory_space<vmem>>) attributes {dimension_semantics = [#tpu.dimension_semantics<parallel>], iteration_bounds = array<i64: 1>, scalar_prefetch = 0 : i64, scratch_operands = 0 : i64, tpu.core_type = #tpu.core_type<tc>, window_params = [{transform_indices = @transform_0, window_bounds = array<i64: 8, 42>}, {pipeline_mode = #tpu.pipeline_mode<synchronous>, transform_indices = @transform_1, window_bounds = array<i64: 42, 64>}, {pipeline_mode = #tpu.pipeline_mode<synchronous>, transform_indices = @transform_2, window_bounds = array<i64: 1, 64>}, {pipeline_mode = #tpu.pipeline_mode<synchronous>, transform_indices = @transform_3, window_bounds = array<i64: 64, 1>}, {pipeline_mode = #tpu.pipeline_mode<synchronous>, transform_indices = @transform_4, window_bounds = array<i64: 1, 1>}, {transform_indices = @transform_5, window_bounds = array<i64: 8, 1>}]} {
    %c0 = arith.constant 0 : index
    %c0_0 = arith.constant 0 : index
    %0 = vector.load %arg1[%c0, %c0_0] : memref<8x42xf32, #tpu.memory_space<vmem>>, vector<8x42xf32>
    %c0_1 = arith.constant 0 : index
    %c0_2 = arith.constant 0 : index
    %1 = vector.load %arg2[%c0_1, %c0_2] : memref<42x64xf32, #tpu.memory_space<vmem>>, vector<42x64xf32>
    %cst = arith.constant dense<0.000000e+00> : vector<8x64xf32>
    %2 = tpu.matmul %0, %1, %cst {dimension_numbers = #tpu.dot_dimension_numbers<[1], [0], [0], [1], [0, 0, 1, 1], [], []>} : vector<8x42xf32>, vector<42x64xf32>, vector<8x64xf32> -> vector<8x64xf32>
    %c0_3 = arith.constant 0 : index
    %c0_4 = arith.constant 0 : index
    %3 = vector.load %arg3[%c0_3, %c0_4] : memref<1x64xf32, #tpu.memory_space<vmem>>, vector<1x64xf32>
    %4 = vector.broadcast %3 : vector<1x64xf32> to vector<8x64xf32>
    %5 = arith.addf %2, %4 : vector<8x64xf32>
    %cst_5 = arith.constant 0.000000e+00 : f32
    %6 = vector.broadcast %cst_5 : f32 to vector<8x64xf32>
    %7 = arith.maximumf %5, %6 : vector<8x64xf32>
    %8 = arith.truncf %7 : vector<8x64xf32> to vector<8x64xbf16>
    %c0_6 = arith.constant 0 : index
    %c0_7 = arith.constant 0 : index
    %9 = vector.load %arg4[%c0_6, %c0_7] : memref<64x1xbf16, #tpu.memory_space<vmem>>, vector<64x1xbf16>
    %cst_8 = arith.constant dense<0.000000e+00> : vector<8x1xf32>
    %10 = tpu.matmul %8, %9, %cst_8 {dimension_numbers = #tpu.dot_dimension_numbers<[1], [0], [0], [1], [0, 0, 1, 1], [], []>} : vector<8x64xbf16>, vector<64x1xbf16>, vector<8x1xf32> -> vector<8x1xf32>
    %c0_9 = arith.constant 0 : index
    %c0_10 = arith.constant 0 : index
    %11 = vector.load %arg5[%c0_9, %c0_10] : memref<1x1xf32, #tpu.memory_space<vmem>>, vector<1x1xf32>
    %12 = vector.broadcast %11 : vector<1x1xf32> to vector<8x1xf32>
    %13 = arith.addf %10, %12 : vector<8x1xf32>
    %cst_11 = arith.constant 0.000000e+00 : f32
    %14 = vector.broadcast %cst_11 : f32 to vector<8x1xf32>
    %15 = arith.subf %14, %13 : vector<8x1xf32>
    %16 = math.exp %15 : vector<8x1xf32>
    %cst_12 = arith.constant 1.000000e+00 : f32
    %17 = vector.broadcast %cst_12 : f32 to vector<8x1xf32>
    %18 = arith.addf %17, %16 : vector<8x1xf32>
    %cst_13 = arith.constant 1.000000e+00 : f32
    %19 = vector.broadcast %cst_13 : f32 to vector<8x1xf32>
    %20 = arith.divf %19, %18 : vector<8x1xf32>
    %c0_14 = arith.constant 0 : index
    %c0_15 = arith.constant 0 : index
    %21 = vector.load %arg6[%c0_14, %c0_15] : memref<8x1xf32, #tpu.memory_space<vmem>>, vector<8x1xf32>
    tpu.vector_store %arg6[%c0_14, %c0_15], %20 {strides = array<i32>} : memref<8x1xf32, #tpu.memory_space<vmem>>, vector<8x1xf32>,
    return
  }
  func.func @transform_0(%arg0: i32) -> (i32, i32) {
    %c0_i32 = arith.constant 0 : i32
    %c0_i32_0 = arith.constant 0 : i32
    return %arg0, %c0_i32 : i32, i32
  }
  func.func @transform_1(%arg0: i32) -> (i32, i32) {
    %c0_i32 = arith.constant 0 : i32
    %c0_i32_0 = arith.constant 0 : i32
    %c0_i32_1 = arith.constant 0 : i32
    return %c0_i32, %c0_i32_0 : i32, i32
  }
  func.func @transform_2(%arg0: i32) -> (i32, i32) {
    %c0_i32 = arith.constant 0 : i32
    %c0_i32_0 = arith.constant 0 : i32
    %c0_i32_1 = arith.constant 0 : i32
    return %c0_i32, %c0_i32_0 : i32, i32
  }
  func.func @transform_3(%arg0: i32) -> (i32, i32) {
    %c0_i32 = arith.constant 0 : i32
    %c0_i32_0 = arith.constant 0 : i32
    %c0_i32_1 = arith.constant 0 : i32
    return %c0_i32, %c0_i32_0 : i32, i32
  }
  func.func @transform_4(%arg0: i32) -> (i32, i32) {
    %c0_i32 = arith.constant 0 : i32
    %c0_i32_0 = arith.constant 0 : i32
    %c0_i32_1 = arith.constant 0 : i32
    return %c0_i32, %c0_i32_0 : i32, i32
  }
  func.func @transform_5(%arg0: i32) -> (i32, i32) {
    %c0_i32 = arith.constant 0 : i32
    %c0_i32_0 = arith.constant 0 : i32
    return %arg0, %c0_i32 : i32, i32
  }
}

</mosaic_0001>

<bundles_post_ra>
// kernel: tpu_custom_call.1
= control target key start
LH: loop header
LB: loop body
LE: loop exit
PB: predicated region body
PF: predicated region fallthrough
CT: control target
= control target key end

     0   :  { %s277_s0 = inlined_call_operand.vmem [shape: f32[8,42], index: 0, kind: input, shape index: {}]   ;;  %s278_s1 = inlined_call_operand.hbm [shape: f32[42,64], index: 1, kind: input, shape index: {}]   ;;  %s279_s2 = inlined_call_operand.vmem [shape: f32[1,64], index: 2, kind: input, shape index: {}]   ;;  %s280_s3 = inlined_call_operand.vmem [shape: bf16[64,1], index: 3, kind: input, shape index: {}]   ;;  %s281_s4 = inlined_call_operand.<no memory space> [shape: f32[1,1], index: 4, kind: input, shape index: {}]   ;;  %s282_s5 = inlined_call_operand.vmem [shape: f32[8,1], index: 5, kind: output, shape index: {}]  }
   0x1   :  { %v10_v0 = vstv %s281_s4 }
   0x2   :  { %11 = vst [vmem:[#allocation2] sm:$0x1] %v10_v0 }
   0x3   :  { %12 = vsyncpa [#allocation4], 0  ;;  %s19_s22 = sshll.u32 %s278_s1, 4  ;;  %s217_s23 = smov [#allocation3]   ;;  %s20_s22 = int_to_ptr.hbm [resolvable:$true] %s19_s22 }
   0x4   :  { %s21_s24 = sshll.u32 %s217_s23, 4  ;;  %s218_s25 = smov 128   ;;  %s22_s24 = int_to_ptr.vmem [resolvable:$true] %s21_s24 }
   0x5   :  { %s219_s26 = smov 8  }
   0x6   :  { %27 = dma.hbm_to_vmem [thread:$0]  %s20_s22, 768, %s22_s24, [#allocation4], %s218_s25, %s218_s25, %s219_s26  }
   0x7   :  { %215 = dma.done.wait [#allocation4], 768  }
   0x8   :  { %216 = vsyncadd [#allocation4], 4294966528  ;;  %vm54_vm0 = vcmask 1041408   ;;  %v45_v1 = vld [vmem:[#allocation3 + $0x28] sm:$0x3]  ;;  %v44_v2 = vld [vmem:[#allocation3 + $0x20] sm:$0xff] }
   0x9   :  { %159 = vmatpush.msk.msra.mxu0 %vm54_vm0, %v45_v1  ;;  %v43_v3 = vld [vmem:[#allocation3 + $0x18] sm:$0xff]  ;;  %v42_v5 = vld [vmem:[#allocation3 + $0x10] sm:$0xff]  ;;  %v41_v7 = vld [vmem:[#allocation3 + $0x8] sm:$0xff]  ;;  %vm50_vm1 = vcmask 343040   ;;  %vm116_vm2 = vcmask 523264   ;;  %vm152_vm6 = vcmask 7168  }
   0xa   :  { %v181_v4 = vld [vmem:[%s280_s3 + $0x18] sm:$0xff]  ;;  %v180_v6 = vld [vmem:[%s280_s3 + $0x10] sm:$0xff]  ;;  %v40_v8 = vld [vmem:[#allocation3] sm:$0xff] }
   0xb   :  { %69 = vmatpush.msra.mxu0 %v44_v2  ;;  %124 = vmatpush.bf16.msra.mxu1 %v181_v4  ;;  %v39_v9 = vld [vmem:[%s277_s0] sm:$0xff]  ;;  %v179_v10 = vld [vmem:[%s280_s3 + $0x8] sm:$0xff] }
   0xc   :  { %v178_v11 = vld [vmem:[%s280_s3] sm:$0xff] }
   0xd   :  { %70 = vmatpush.msra.mxu0 %v43_v3  ;;  %v185_v12 = vld [vmem:[%s279_s2] ss:$0 sm:$0xff] }
   0xe   :  { %v186_v17 = vld [vmem:[#allocation2] ss:$0 sm:$0xff] }
   0xf   :  { %71 = vmatpush.msra.mxu0 %v42_v5  ;;  %125 = vmatpush.bf16.msra.mxu1 %v180_v6 }
  0x11   :  { %72 = vmatpush.msra.mxu0 %v41_v7 }
  0x13   :  { %73 = vmatpush.msra.mxu0 %v40_v8  ;;  %126 = vmatpush.bf16.msra.mxu1 %v179_v10 }
  0x14   :  { %160 = vmatmul.msk.f32.vlgmr.msra.gmra.mxu0 %vm50_vm1, %v39_v9 }
  0x17   :  { %127 = vmatpush.bf16.msra.mxu1 %v178_v11 }
  0x91   :  { %v75_v13 = vpop.f32.mrf.mxu0 }
  0x92   :  { %v76_v14 = vadd.f32 %v185_v12, %v75_v13 }
  0x94   :  { %v78_v15 = vmax.f32 %v76_v14, 0.0 }
  0x96   :  { %v79_v16 = vpack.c.bf16 %v78_v15, %v78_v15 }
  0x98   :  { %177 = vmatmul.msk.bf16.vlgmr.msra.gmra.mxu1 %vm116_vm2, %v79_v16 }
 0x115   :  { %v129_v18 = vpop.f32.mrf.mxu1 }
 0x116   :  { %v130_v19 = vadd.f32 %v186_v17, %v129_v18 }
 0x118   :  { %v133_v20 = vsub.f32 0.0, %v130_v19 }
 0x11a   :  { %v134_v21 = vmul.f32 1.442695, %v133_v20 }
 0x11c   :  { %187 = vpow2.f32 %v134_v21 }
 0x11d   :  { %v131_v22 = vpop.f32.mrf.mxu1 }
 0x122   :  { %v188_v23 = vpop.eup %187 }
 0x123   :  { %v136_v24 = vadd.f32 1.0, %v188_v23 }
 0x125   :  { %189 = vrcp.f32 %v136_v24  ;;  %v148_v28 = vand.u32 2147483648, %v136_v24  ;;  %v146_v30 = vand.u32 2147483647, %v136_v24  ;;  %vm142_vm4 = vweird.f32 %v136_v24 }
 0x127   :  { %v149_v32 = vor.u32 1.1754944e-38, %v148_v28  ;;  %vm147_vm7 = vcmp.eq.f32.partialorder %v146_v30, 8.507059e+37 }
 0x12b   :  { %v190_v25 = vpop.eup %189 }
 0x12c   :  { %v138_v26 = vmul.f32 %v190_v25, %v136_v24  ;;  %vm143_vm3 = vweird.f32 %v190_v25 }
 0x12d   :  { %vm144_vm5 = vmor %vm142_vm4, %vm143_vm3 }
 0x12e   :  { %v139_v27 = vsub.f32 1.0, %v138_v26 }
 0x130   :  { %v140_v29 = vmul.f32 %v190_v25, %v139_v27 }
 0x132   :  { %v141_v31 = vadd.f32 %v190_v25, %v140_v29 }
 0x134   :  { %v145_v33 = vsel %vm144_vm5, %v190_v25, %v141_v31 }
 0x135   :  { %v150_v34 = vsel %vm147_vm7, %v149_v32, %v145_v33 }
 0x136   :  { %153 = vst.msk [vmem:[%s282_s5] sm:$0xff] %vm152_vm6, %v150_v34 }
 0x137   :  { %158 = vsyncpa [#allocation4], 1 }

</bundles_post_ra>
